<compile_context>
chip_gen: v7x
topology: tpu7x:2x2x1
jax: 0.10.0
libtpu: 0.0.40
codegen_flags: <defaults>
</compile_context>

<pallas_src>
import functools

import jax
import jax.numpy as jnp
from jax import lax
from jax.experimental import pallas as pl
from jax.experimental.pallas import tpu as pltpu


def _conv1d_k3_kernel(x_ref, w_ref, b_ref, out_ref, *, L):
    """Kernel-size-3, stride-1, pad-1 Conv1d with batch folded into rows.

    x_ref  : (M, Cin)        f32, M = B*L rows, batch-major / length-minor
    w_ref  : (3, Cin, Cout)  bf16, tap-major weights
    b_ref  : (1, Cout)       f32
    out_ref: (M, Cout)       f32, lane-dense output (NLC rows)
    """
    M = x_ref.shape[0]

    x = x_ref[...].astype(w_ref.dtype)          # bf16 right after load

    # One MXU matmul per tap on the unshifted input, f32 accumulation.
    p0 = jnp.dot(x, w_ref[0], preferred_element_type=jnp.float32)
    p1 = jnp.dot(x, w_ref[1], preferred_element_type=jnp.float32)
    p2 = jnp.dot(x, w_ref[2], preferred_element_type=jnp.float32)

    # y[l] = p0[l-1] + p1[l] + p2[l+1]; align partials with circular XLU rolls along
    # the flattened length axis.  Rows at sequence boundaries (l == 0 / l == L-1)
    # correspond to the conv's zero padding and also absorb the roll wrap-around and
    # any cross-batch leakage, so they are masked to zero.
    l_idx = lax.broadcasted_iota(jnp.int32, (M, 1), 0) % L
    p0s = jnp.where(l_idx != 0, pltpu.roll(p0, shift=1, axis=0), 0.0)
    p2s = jnp.where(l_idx != (L - 1), pltpu.roll(p2, shift=M - 1, axis=0), 0.0)

    out_ref[...] = (p0s + p1 + p2s + b_ref[...]).astype(out_ref.dtype)


def conv1d_k3(x_2d, w_kio_bf16, bias_2d, *, L):
    """Conv1d(kernel=3, stride=1, padding=1) on batch-folded NLC rows.

    x_2d       : (B*L, Cin)       float32
    w_kio_bf16 : (3, Cin, Cout)   bfloat16, tap-major
    bias_2d    : (1, Cout)        float32
    returns (B*L, Cout) float32
    """
    M, _ = x_2d.shape
    Cout = w_kio_bf16.shape[2]
    # No grid / BlockSpecs: whole operands (a few hundred KiB) live in VMEM.
    return pl.pallas_call(
        functools.partial(_conv1d_k3_kernel, L=L),
        out_shape=jax.ShapeDtypeStruct((M, Cout), jnp.float32),
    )(x_2d, w_kio_bf16, bias_2d)


def init_dsnet_params(w1, b1, w2, b2):
    """One-time conversion of torch-layout Conv1d params to kernel-ready form.

    w1/b1 feed the dead linear1 path (its conv result is never returned), so they are
    accepted for interface fidelity and dropped.
    """
    del w1, b1
    return {
        "w2_kio": jnp.transpose(w2, (2, 1, 0)).astype(jnp.bfloat16),  # (3, Cin, Cout)
        "b2": b2.reshape(1, -1).astype(jnp.float32),                  # (1, Cout)
    }


@jax.jit
def dsnet_forward(params, r, x):
    """DSNet.forward.

    r : (B, 1, 512), x : (B, channel, 512)   (torch NCL)
    returns x_t: (B, 64, channel)            (torch NCL)
    """
    # TODO(synk): the original forward computes linear1(torch.cat(r, x)) -- a malformed
    # cat call whose conv result is never used. It is dead code (identical returned
    # value) and dropped here; r stays in the signature for interface fidelity.
    del r
    B, channel, cin = x.shape
    # x.permute(0, 2, 1) is torch-NCL (B, 512, channel); in NLC layout that is exactly
    # x itself: Cin = 512 on the lane axis, L = channel on the length axis.
    y = conv1d_k3(x.reshape(B * channel, cin), params["w2_kio"], params["b2"], L=channel)
    # Lane-dense kernel output -> torch NCL; tiny permute fused by XLA in the wrapper.
    return jnp.transpose(y.reshape(B, channel, -1), (0, 2, 1))       # (B, 64, channel)


def _conv1d_ref(x_nlc, w_kio, bias):
    """Plain-JAX reference (NLC in, NLC out) for correctness checking."""
    L = x_nlc.shape[1]
    xpad = jnp.pad(x_nlc, ((0, 0), (1, 1), (0, 0)))
    out = sum(jnp.einsum("blc,co->blo", xpad[:, k:k + L, :], w_kio[k]) for k in range(3))
    return out + bias[None, None, :]


if __name__ == "__main__":
    key = jax.random.PRNGKey(0)
    B, channel, L_fixed = 2, 8, 512   # linear2 hard-codes 512 input channels

    k1, k2, k3, k4, k5, k6 = jax.random.split(key, 6)
    x = jax.random.normal(k1, (B, channel, L_fixed), jnp.float32)   # torch NCL input
    r = jax.random.normal(k2, (B, 1, L_fixed), jnp.float32)

    # Deterministic synthetic parameters (torch Conv1d weight layout: (out, in, k)).
    w1 = 0.10 * jax.random.normal(k3, (channel // 2, channel + 1, 3), jnp.float32)
    b1 = 0.10 * jax.random.normal(k4, (channel // 2,), jnp.float32)
    w2 = 0.05 * jax.random.normal(k5, (64, L_fixed, 3), jnp.float32)
    b2 = 0.10 * jax.random.normal(k6, (64,), jnp.float32)

    params = init_dsnet_params(w1, b1, w2, b2)                      # one-time weight prep
    out = jax.block_until_ready(dsnet_forward(params, r, x))
    assert out.shape == (B, 64, channel), out.shape

    # Reference for linear2 using the same bf16 operand rounding as the kernel
    # (f32 accumulation) -- only accumulation order differs.
    w2_kio = jnp.transpose(w2, (2, 1, 0))
    x_q = x.astype(jnp.bfloat16).astype(jnp.float32)
    w_q = w2_kio.astype(jnp.bfloat16).astype(jnp.float32)
    ref = jnp.transpose(_conv1d_ref(x_q, w_q, b2), (0, 2, 1))       # (B, 64, channel)
    err = float(jnp.max(jnp.abs(out - ref)))
    assert jnp.allclose(out, ref, atol=2e-2, rtol=2e-2), err

    print("KERNEL_OK")
</pallas_src>

<mosaic_0001>
module attributes {stable_mosaic.version = 11 : i64} {
  func.func @_conv1d_k3_kernel(%arg0: memref<16x512xf32, #tpu.memory_space<vmem>>, %arg1: memref<3x512x64xbf16, #tpu.memory_space<vmem>>, %arg2: memref<1x64xf32, #tpu.memory_space<vmem>>, %arg3: memref<16x64xf32, #tpu.memory_space<vmem>>) attributes {dimension_semantics = [], scalar_prefetch = 0 : i64, scratch_operands = 0 : i64, tpu.core_type = #tpu.core_type<tc>} {
    %c0 = arith.constant 0 : index
    %c0_0 = arith.constant 0 : index
    %0 = vector.load %arg0[%c0, %c0_0] : memref<16x512xf32, #tpu.memory_space<vmem>>, vector<16x512xf32>
    %1 = arith.truncf %0 : vector<16x512xf32> to vector<16x512xbf16>
    %c0_1 = arith.constant 0 : index
    %c0_2 = arith.constant 0 : index
    %c0_3 = arith.constant 0 : index
    %2 = vector.load %arg1[%c0_1, %c0_2, %c0_3] : memref<3x512x64xbf16, #tpu.memory_space<vmem>>, vector<1x512x64xbf16>
    %3 = vector.shape_cast %2 : vector<1x512x64xbf16> to vector<512x64xbf16>
    %cst = arith.constant dense<0.000000e+00> : vector<16x64xf32>
    %4 = tpu.matmul %1, %3, %cst {dimension_numbers = #tpu.dot_dimension_numbers<[1], [0], [0], [1], [0, 0, 1, 1], [], []>} : vector<16x512xbf16>, vector<512x64xbf16>, vector<16x64xf32> -> vector<16x64xf32>
    %c1 = arith.constant 1 : index
    %c0_4 = arith.constant 0 : index
    %c0_5 = arith.constant 0 : index
    %5 = vector.load %arg1[%c1, %c0_4, %c0_5] : memref<3x512x64xbf16, #tpu.memory_space<vmem>>, vector<1x512x64xbf16>
    %6 = vector.shape_cast %5 : vector<1x512x64xbf16> to vector<512x64xbf16>
    %cst_6 = arith.constant dense<0.000000e+00> : vector<16x64xf32>
    %7 = tpu.matmul %1, %6, %cst_6 {dimension_numbers = #tpu.dot_dimension_numbers<[1], [0], [0], [1], [0, 0, 1, 1], [], []>} : vector<16x512xbf16>, vector<512x64xbf16>, vector<16x64xf32> -> vector<16x64xf32>
    %c2 = arith.constant 2 : index
    %c0_7 = arith.constant 0 : index
    %c0_8 = arith.constant 0 : index
    %8 = vector.load %arg1[%c2, %c0_7, %c0_8] : memref<3x512x64xbf16, #tpu.memory_space<vmem>>, vector<1x512x64xbf16>
    %9 = vector.shape_cast %8 : vector<1x512x64xbf16> to vector<512x64xbf16>
    %cst_9 = arith.constant dense<0.000000e+00> : vector<16x64xf32>
    %10 = tpu.matmul %1, %9, %cst_9 {dimension_numbers = #tpu.dot_dimension_numbers<[1], [0], [0], [1], [0, 0, 1, 1], [], []>} : vector<16x512xbf16>, vector<512x64xbf16>, vector<16x64xf32> -> vector<16x64xf32>
    %11 = tpu.iota {dimensions = array<i32: 0>} : vector<16x1xi32>
    %c8_i32 = arith.constant 8 : i32
    %c0_i32 = arith.constant 0 : i32
    %12 = arith.cmpi eq, %c8_i32, %c0_i32 : i32
    %c1_i32 = arith.constant 1 : i32
    %13 = arith.select %12, %c1_i32, %c8_i32 : i32
    %14 = vector.broadcast %13 : i32 to vector<16x1xi32>
    %15 = arith.remsi %11, %14 : vector<16x1xi32>
    %c0_i32_10 = arith.constant 0 : i32
    %16 = vector.broadcast %c0_i32_10 : i32 to vector<16x1xi32>
    %17 = arith.cmpi ne, %15, %16 : vector<16x1xi32>
    %c0_i32_11 = arith.constant 0 : i32
    %18 = vector.broadcast %c0_i32_11 : i32 to vector<16x1xi32>
    %19 = arith.cmpi slt, %15, %18 : vector<16x1xi32>
    %c0_i32_12 = arith.constant 0 : i32
    %20 = arith.cmpi slt, %13, %c0_i32_12 : i32
    %21 = vector.broadcast %20 : i1 to vector<16x1xi1>
    %22 = vector.broadcast %21 : vector<16x1xi1> to vector<16x1xi1>
    %23 = arith.xori %19, %22 : vector<16x1xi1>
    %24 = arith.andi %23, %17 : vector<16x1xi1>
    %25 = vector.broadcast %13 : i32 to vector<16x1xi32>
    %26 = arith.addi %15, %25 : vector<16x1xi32>
    %27 = arith.select %24, %26, %15 : vector<16x1xi1>, vector<16x1xi32>
    %c0_i32_13 = arith.constant 0 : i32
    %28 = vector.broadcast %c0_i32_13 : i32 to vector<16x1xi32>
    %29 = arith.cmpi ne, %27, %28 : vector<16x1xi32>
    %c1_i32_14 = arith.constant 1 : i32
    %30 = tpu.dynamic_rotate %4 by %c1_i32_14 dim 0 : vector<16x64xf32>, i32 -> vector<16x64xf32>
    %cst_15 = arith.constant 0.000000e+00 : f32
    %31 = vector.shape_cast %29 : vector<16x1xi1> to vector<16x1xi1>
    %32 = vector.broadcast %31 : vector<16x1xi1> to vector<16x64xi1>
    %33 = vector.broadcast %cst_15 : f32 to vector<16x64xf32>
    %34 = arith.select %32, %30, %33 : vector<16x64xi1>, vector<16x64xf32>
    %c7_i32 = arith.constant 7 : i32
    %35 = vector.broadcast %c7_i32 : i32 to vector<16x1xi32>
    %36 = arith.cmpi ne, %27, %35 : vector<16x1xi32>
    %c15_i32 = arith.constant 15 : i32
    %37 = tpu.dynamic_rotate %10 by %c15_i32 dim 0 : vector<16x64xf32>, i32 -> vector<16x64xf32>
    %cst_16 = arith.constant 0.000000e+00 : f32
    %38 = vector.shape_cast %36 : vector<16x1xi1> to vector<16x1xi1>
    %39 = vector.broadcast %38 : vector<16x1xi1> to vector<16x64xi1>
    %40 = vector.broadcast %cst_16 : f32 to vector<16x64xf32>
    %41 = arith.select %39, %37, %40 : vector<16x64xi1>, vector<16x64xf32>
    %42 = arith.addf %34, %7 : vector<16x64xf32>
    %43 = arith.addf %42, %41 : vector<16x64xf32>
    %c0_17 = arith.constant 0 : index
    %c0_18 = arith.constant 0 : index
    %44 = vector.load %arg2[%c0_17, %c0_18] : memref<1x64xf32, #tpu.memory_space<vmem>>, vector<1x64xf32>
    %45 = vector.broadcast %44 : vector<1x64xf32> to vector<16x64xf32>
    %46 = arith.addf %43, %45 : vector<16x64xf32>
    %c0_19 = arith.constant 0 : index
    %c0_20 = arith.constant 0 : index
    %47 = vector.load %arg3[%c0_19, %c0_20] : memref<16x64xf32, #tpu.memory_space<vmem>>, vector<16x64xf32>
    tpu.vector_store %arg3[%c0_19, %c0_20], %46 {strides = array<i32>} : memref<16x64xf32, #tpu.memory_space<vmem>>, vector<16x64xf32>,
    return
  }
}

</mosaic_0001>

<bundles_post_ra>
// kernel: dsnet_forward.1
= control target key start
LH: loop header
LB: loop body
LE: loop exit
PB: predicated region body
PF: predicated region fallthrough
CT: control target
= control target key end

     0   :  { %s1979_s0 = inlined_call_operand.vmem [shape: f32[16,512], index: 0, kind: input, shape index: {}]   ;;  %s1980_s1 = inlined_call_operand.vmem [shape: bf16[3,512,64], index: 1, kind: input, shape index: {}]   ;;  %s1981_s2 = inlined_call_operand.vmem [shape: f32[1,64], index: 2, kind: input, shape index: {}]   ;;  %s1982_s3 = inlined_call_operand.hbm [shape: f32[16,64], index: 3, kind: output, shape index: {}]  }
   0x1   :  { %v1489_v0 = vld [vmem:[%s1980_s1 + $0x40] sm:$0xff]   ;;  %v1493_v4 = vld [vmem:[%s1980_s1 + $0x48] sm:$0xff]   ;;  %v1497_v8 = vld [vmem:[%s1980_s1 + $0x50] sm:$0xff]  }
   0x2   :  { %v1490_v1 = vld [vmem:[%s1980_s1 + $0xc0] sm:$0xff]   ;;  %1354 = vmatprep.subr.bf16.mxu0 %v1489_v0  ;;  %v1494_v5 = vld [vmem:[%s1980_s1 + $0xc8] sm:$0xff]   ;;  %v1498_v9 = vld [vmem:[%s1980_s1 + $0xd0] sm:$0xff]  }
   0x3   :  { %v1491_v2 = vld [vmem:[%s1980_s1] sm:$0xff]   ;;  %1376 = vmatprep.subr.bf16.mxu1 %v1490_v1  ;;  %v1495_v6 = vld [vmem:[%s1980_s1 + $0x8] sm:$0xff]   ;;  %v1499_v10 = vld [vmem:[%s1980_s1 + $0x10] sm:$0xff]  }
   0x4   :  { %v1492_v3 = vld [vmem:[%s1980_s1 + $0x80] sm:$0xff]   ;;  %1355 = vmatpush3.bf16.msra.mxu0 %v1491_v2  ;;  %v1496_v7 = vld [vmem:[%s1980_s1 + $0x88] sm:$0xff]   ;;  %v1500_v11 = vld [vmem:[%s1980_s1 + $0x90] sm:$0xff]  }
   0x5   :  { %1377 = vmatpush3.bf16.msra.mxu1 %v1492_v3  ;;  %1356 = vmatprep.subr.bf16.mxu0 %v1493_v4  ;;  %v1501_v12 = vld [vmem:[%s1980_s1 + $0x58] sm:$0xff]   ;;  %v1505_v16 = vld [vmem:[%s1980_s1 + $0x60] sm:$0xff]   ;;  %v1509_v20 = vld [vmem:[%s1980_s1 + $0x68] sm:$0xff]  }
   0x6   :  { %1378 = vmatprep.subr.bf16.mxu1 %v1494_v5  ;;  %v1502_v13 = vld [vmem:[%s1980_s1 + $0xd8] sm:$0xff]   ;;  %v1506_v17 = vld [vmem:[%s1980_s1 + $0xe0] sm:$0xff]   ;;  %v1510_v21 = vld [vmem:[%s1980_s1 + $0xe8] sm:$0xff]  }
   0x7   :  { %v1503_v14 = vld [vmem:[%s1980_s1 + $0x18] sm:$0xff]   ;;  %v1507_v18 = vld [vmem:[%s1980_s1 + $0x20] sm:$0xff]   ;;  %v1511_v22 = vld [vmem:[%s1980_s1 + $0x28] sm:$0xff]  }
   0x8   :  { %1357 = vmatpush3.bf16.msra.mxu0 %v1495_v6  ;;  %v1504_v15 = vld [vmem:[%s1980_s1 + $0x98] sm:$0xff]   ;;  %v1508_v19 = vld [vmem:[%s1980_s1 + $0xa0] sm:$0xff]   ;;  %v1512_v23 = vld [vmem:[%s1980_s1 + $0xa8] sm:$0xff]  }
   0x9   :  { %1379 = vmatpush3.bf16.msra.mxu1 %v1496_v7  ;;  %1358 = vmatprep.subr.bf16.mxu0 %v1497_v8  ;;  %v1513_v24 = vld [vmem:[%s1980_s1 + $0x70] sm:$0xff]   ;;  %v1517_v28 = vld [vmem:[%s1980_s1 + $0x78] sm:$0xff]   ;;  %v17_v32 = vld [vmem:[%s1979_s0 + $0x8] sm:$0xff] }
   0xa   :  { %1380 = vmatprep.subr.bf16.mxu1 %v1498_v9  ;;  %v1514_v25 = vld [vmem:[%s1980_s1 + $0xf0] sm:$0xff]   ;;  %v1518_v29 = vld [vmem:[%s1980_s1 + $0xf8] sm:$0xff]   ;;  %v21_v33 = vld [vmem:[%s1979_s0 + $0x28] sm:$0xff] }
   0xb   :  { %v1515_v26 = vld [vmem:[%s1980_s1 + $0x30] sm:$0xff]   ;;  %v1519_v30 = vld [vmem:[%s1980_s1 + $0x38] sm:$0xff]   ;;  %v1737_v35 = vpack.c.bf16 %v21_v33, %v17_v32  ;;  %v16_v37 = vld [vmem:[%s1979_s0] sm:$0xff] }
   0xc   :  { %1359 = vmatpush3.bf16.msra.mxu0 %v1499_v10  ;;  %v1516_v27 = vld [vmem:[%s1980_s1 + $0xb0] sm:$0xff]   ;;  %v1520_v31 = vld [vmem:[%s1980_s1 + $0xb8] sm:$0xff]   ;;  %v20_v38 = vld [vmem:[%s1979_s0 + $0x20] sm:$0xff] }
   0xd   :  { %1381 = vmatpush3.bf16.msra.mxu1 %v1500_v11  ;;  %1360 = vmatprep.subr.bf16.mxu0 %v1501_v12  ;;  %v19_v34 = vld [vmem:[%s1979_s0 + $0x18] sm:$0xff]  ;;  %v1750_v40 = vpack.c.bf16 %v20_v38, %v16_v37  ;;  %v18_v41 = vld [vmem:[%s1979_s0 + $0x10] sm:$0xff]  ;;  %v1521_v44 = vld [vmem:[%s1980_s1 + $0x140] sm:$0xff]  }
   0xe   :  { %1382 = vmatprep.subr.bf16.mxu1 %v1502_v13  ;;  %v23_v36 = vld [vmem:[%s1979_s0 + $0x38] sm:$0xff]  ;;  %v22_v42 = vld [vmem:[%s1979_s0 + $0x30] sm:$0xff]  ;;  %316 = vmatprep.mubr.bf16.mxu0 %v1737_v35  ;;  %v1522_v45 = vld [vmem:[%s1980_s1 + $0x1c0] sm:$0xff]  }
   0xf   :  { %v1748_v39 = vpack.c.bf16 %v23_v36, %v19_v34  ;;  %v1759_v43 = vpack.c.bf16 %v22_v42, %v18_v41  ;;  %v1523_v46 = vld [vmem:[%s1980_s1 + $0x100] sm:$0xff]   ;;  %v1525_v48 = vld [vmem:[%s1980_s1 + $0x148] sm:$0xff]   ;;  %v1529_v52 = vld [vmem:[%s1980_s1 + $0x150] sm:$0xff]  }
  0x10   :  { %1361 = vmatpush3.bf16.msra.mxu0 %v1503_v14  ;;  %v1524_v47 = vld [vmem:[%s1980_s1 + $0x180] sm:$0xff]   ;;  %v1526_v49 = vld [vmem:[%s1980_s1 + $0x1c8] sm:$0xff]   ;;  %v1530_v53 = vld [vmem:[%s1980_s1 + $0x1d0] sm:$0xff]  }
  0x11   :  { %1383 = vmatpush3.bf16.msra.mxu1 %v1504_v15  ;;  %1362 = vmatprep.subr.bf16.mxu0 %v1505_v16  ;;  %v1527_v50 = vld [vmem:[%s1980_s1 + $0x108] sm:$0xff]   ;;  %v1531_v54 = vld [vmem:[%s1980_s1 + $0x110] sm:$0xff]   ;;  %v1533_v56 = vld [vmem:[%s1980_s1 + $0x158] sm:$0xff]  }
  0x12   :  { %1384 = vmatprep.subr.bf16.mxu1 %v1506_v17  ;;  %357 = vmatprep.mubr.bf16.mxu1 %v1748_v39  ;;  %v1528_v51 = vld [vmem:[%s1980_s1 + $0x188] sm:$0xff]   ;;  %v1532_v55 = vld [vmem:[%s1980_s1 + $0x190] sm:$0xff]   ;;  %v1534_v57 = vld [vmem:[%s1980_s1 + $0x1d8] sm:$0xff]  }
  0x13   :  { %v1535_v58 = vld [vmem:[%s1980_s1 + $0x118] sm:$0xff]   ;;  %v1537_v60 = vld [vmem:[%s1980_s1 + $0x160] sm:$0xff]   ;;  %v1541_v0 = vld [vmem:[%s1980_s1 + $0x168] sm:$0xff]  }
  0x14   :  { %1363 = vmatpush3.bf16.msra.mxu0 %v1507_v18  ;;  %v1536_v59 = vld [vmem:[%s1980_s1 + $0x198] sm:$0xff]   ;;  %v1538_v61 = vld [vmem:[%s1980_s1 + $0x1e0] sm:$0xff]   ;;  %v1542_v1 = vld [vmem:[%s1980_s1 + $0x1e8] sm:$0xff]  }
  0x15   :  { %1385 = vmatpush3.bf16.msra.mxu1 %v1508_v19  ;;  %1364 = vmatprep.subr.bf16.mxu0 %v1509_v20  ;;  %v1539_v62 = vld [vmem:[%s1980_s1 + $0x120] sm:$0xff]   ;;  %v1543_v2 = vld [vmem:[%s1980_s1 + $0x128] sm:$0xff]   ;;  %v1545_v4 = vld [vmem:[%s1980_s1 + $0x170] sm:$0xff]  }
  0x16   :  { %1386 = vmatprep.subr.bf16.mxu1 %v1510_v21  ;;  %v1540_v63 = vld [vmem:[%s1980_s1 + $0x1a0] sm:$0xff]   ;;  %v1544_v3 = vld [vmem:[%s1980_s1 + $0x1a8] sm:$0xff]   ;;  %v1546_v5 = vld [vmem:[%s1980_s1 + $0x1f0] sm:$0xff]  }
  0x17   :  { %v1547_v6 = vld [vmem:[%s1980_s1 + $0x130] sm:$0xff]   ;;  %v1549_v8 = vld [vmem:[%s1980_s1 + $0x178] sm:$0xff]   ;;  %v1553_v12 = vld [vmem:[%s1980_s1 + $0x240] sm:$0xff]  }
  0x18   :  { %1365 = vmatpush3.bf16.msra.mxu0 %v1511_v22  ;;  %v1548_v7 = vld [vmem:[%s1980_s1 + $0x1b0] sm:$0xff]   ;;  %v1550_v9 = vld [vmem:[%s1980_s1 + $0x1f8] sm:$0xff]   ;;  %v1554_v13 = vld [vmem:[%s1980_s1 + $0x2c0] sm:$0xff]  }
  0x19   :  { %1387 = vmatpush3.bf16.msra.mxu1 %v1512_v23  ;;  %1366 = vmatprep.subr.bf16.mxu0 %v1513_v24  ;;  %v1551_v10 = vld [vmem:[%s1980_s1 + $0x138] sm:$0xff]   ;;  %v1555_v14 = vld [vmem:[%s1980_s1 + $0x200] sm:$0xff]   ;;  %v1557_v16 = vld [vmem:[%s1980_s1 + $0x248] sm:$0xff]  }
  0x1a   :  { %1388 = vmatprep.subr.bf16.mxu1 %v1514_v25  ;;  %v1552_v11 = vld [vmem:[%s1980_s1 + $0x1b8] sm:$0xff]   ;;  %v1556_v15 = vld [vmem:[%s1980_s1 + $0x280] sm:$0xff]   ;;  %v1558_v17 = vld [vmem:[%s1980_s1 + $0x2c8] sm:$0xff]  }
  0x1b   :  { %v1559_v18 = vld [vmem:[%s1980_s1 + $0x208] sm:$0xff]   ;;  %v1561_v20 = vld [vmem:[%s1980_s1 + $0x250] sm:$0xff]   ;;  %v1565_v24 = vld [vmem:[%s1980_s1 + $0x258] sm:$0xff]  }
  0x1c   :  { %1367 = vmatpush3.bf16.msra.mxu0 %v1515_v26  ;;  %v1560_v19 = vld [vmem:[%s1980_s1 + $0x288] sm:$0xff]   ;;  %v1562_v21 = vld [vmem:[%s1980_s1 + $0x2d0] sm:$0xff]   ;;  %v1566_v25 = vld [vmem:[%s1980_s1 + $0x2d8] sm:$0xff]  }
  0x1d   :  { %1389 = vmatpush3.bf16.msra.mxu1 %v1516_v27  ;;  %1368 = vmatprep.subr.bf16.mxu0 %v1517_v28  ;;  %v1563_v22 = vld [vmem:[%s1980_s1 + $0x210] sm:$0xff]   ;;  %v1567_v26 = vld [vmem:[%s1980_s1 + $0x218] sm:$0xff]   ;;  %v1569_v28 = vld [vmem:[%s1980_s1 + $0x260] sm:$0xff]  }
  0x1e   :  { %1390 = vmatprep.subr.bf16.mxu1 %v1518_v29  ;;  %v1564_v23 = vld [vmem:[%s1980_s1 + $0x290] sm:$0xff]   ;;  %v1568_v27 = vld [vmem:[%s1980_s1 + $0x298] sm:$0xff]   ;;  %v1570_v29 = vld [vmem:[%s1980_s1 + $0x2e0] sm:$0xff]  }
  0x1f   :  { %v1573_v32 = vld [vmem:[%s1980_s1 + $0x268] sm:$0xff]   ;;  %v1577_v36 = vld [vmem:[%s1980_s1 + $0x270] sm:$0xff]   ;;  %v1581_v41 = vld [vmem:[%s1980_s1 + $0x278] sm:$0xff]  }
  0x20   :  { %1369 = vmatpush3.bf16.msra.mxu0 %v1519_v30  ;;  %v1571_v30 = vld [vmem:[%s1980_s1 + $0x220] sm:$0xff]   ;;  %v1574_v33 = vld [vmem:[%s1980_s1 + $0x2e8] sm:$0xff]   ;;  %v1578_v37 = vld [vmem:[%s1980_s1 + $0x2f0] sm:$0xff]  }
  0x21   :  { %1391 = vmatpush3.bf16.msra.mxu1 %v1520_v31  ;;  %1398 = vmatprep.subr.bf16.mxu0 %v1521_v44  ;;  %v1572_v31 = vld [vmem:[%s1980_s1 + $0x2a0] sm:$0xff]   ;;  %v1575_v34 = vld [vmem:[%s1980_s1 + $0x228] sm:$0xff]   ;;  %v1579_v38 = vld [vmem:[%s1980_s1 + $0x230] sm:$0xff]  }
  0x22   :  { %1420 = vmatprep.subr.bf16.mxu1 %v1522_v45  ;;  %v1582_v42 = vld [vmem:[%s1980_s1 + $0x2f8] sm:$0xff]  }
  0x23   :  { %317 = vmatmul.mubr.bf16.vlgmr.msra.gmra.mrb[0].mxu0 %v1750_v40  ;;  %v1583_v44 = vld [vmem:[%s1980_s1 + $0x238] sm:$0xff]  }
  0x24   :  { %358 = vmatmul.mubr.bf16.vlgmr.msra.gmra.mrb[0].mxu1 %v1759_v43  ;;  %655 = vmatprep.mubr.bf16.mxu0 %v1737_v35  ;;  %v1584_v45 = vld [vmem:[%s1980_s1 + $0x2b8] sm:$0xff]  }
  0x25   :  { %1399 = vmatpush3.bf16.msra.mxu0 %v1523_v46  ;;  %696 = vmatprep.mubr.bf16.mxu1 %v1748_v39 }
  0x26   :  { %1421 = vmatpush3.bf16.msra.mxu1 %v1524_v47  ;;  %1400 = vmatprep.subr.bf16.mxu0 %v1525_v48 }
  0x27   :  { %1422 = vmatprep.subr.bf16.mxu1 %v1526_v49 }
  0x29   :  { %1401 = vmatpush3.bf16.msra.mxu0 %v1527_v50 }
  0x2a   :  { %1423 = vmatpush3.bf16.msra.mxu1 %v1528_v51  ;;  %1402 = vmatprep.subr.bf16.mxu0 %v1529_v52 }
  0x2b   :  { %1424 = vmatprep.subr.bf16.mxu1 %v1530_v53 }
  0x2d   :  { %1403 = vmatpush3.bf16.msra.mxu0 %v1531_v54 }
  0x2e   :  { %1425 = vmatpush3.bf16.msra.mxu1 %v1532_v55  ;;  %1404 = vmatprep.subr.bf16.mxu0 %v1533_v56 }
  0x2f   :  { %1426 = vmatprep.subr.bf16.mxu1 %v1534_v57 }
  0x31   :  { %1405 = vmatpush3.bf16.msra.mxu0 %v1535_v58 }
  0x32   :  { %1427 = vmatpush3.bf16.msra.mxu1 %v1536_v59  ;;  %1406 = vmatprep.subr.bf16.mxu0 %v1537_v60 }
  0x33   :  { %1428 = vmatprep.subr.bf16.mxu1 %v1538_v61 }
  0x35   :  { %1407 = vmatpush3.bf16.msra.mxu0 %v1539_v62 }
  0x36   :  { %1429 = vmatpush3.bf16.msra.mxu1 %v1540_v63  ;;  %1408 = vmatprep.subr.bf16.mxu0 %v1541_v0 }
  0x37   :  { %1430 = vmatprep.subr.bf16.mxu1 %v1542_v1 }
  0x39   :  { %1409 = vmatpush3.bf16.msra.mxu0 %v1543_v2 }
  0x3a   :  { %1431 = vmatpush3.bf16.msra.mxu1 %v1544_v3  ;;  %1410 = vmatprep.subr.bf16.mxu0 %v1545_v4 }
  0x3b   :  { %1432 = vmatprep.subr.bf16.mxu1 %v1546_v5 }
  0x3d   :  { %1411 = vmatpush3.bf16.msra.mxu0 %v1547_v6 }
  0x3e   :  { %1433 = vmatpush3.bf16.msra.mxu1 %v1548_v7  ;;  %1412 = vmatprep.subr.bf16.mxu0 %v1549_v8 }
  0x3f   :  { %1434 = vmatprep.subr.bf16.mxu1 %v1550_v9 }
  0x41   :  { %1413 = vmatpush3.bf16.msra.mxu0 %v1551_v10 }
  0x42   :  { %1435 = vmatpush3.bf16.msra.mxu1 %v1552_v11  ;;  %1442 = vmatprep.subr.bf16.mxu0 %v1553_v12 }
  0x43   :  { %1464 = vmatprep.subr.bf16.mxu1 %v1554_v13 }
  0x44   :  { %656 = vmatmul.mubr.bf16.vlgmr.msra.gmra.mrb[4].mxu0 %v1750_v40 }
  0x45   :  { %697 = vmatmul.mubr.bf16.vlgmr.msra.gmra.mrb[4].mxu1 %v1759_v43  ;;  %1443 = vmatpush3.bf16.msra.mxu0 %v1555_v14 }
  0x46   :  { %1465 = vmatpush3.bf16.msra.mxu1 %v1556_v15  ;;  %994 = vmatprep.mubr.bf16.mxu0 %v1737_v35  ;;  %v1576_v35 = vld [vmem:[%s1980_s1 + $0x2a8] sm:$0xff]  }
  0x47   :  { %1444 = vmatprep.subr.bf16.mxu0 %v1557_v16  ;;  %1035 = vmatprep.mubr.bf16.mxu1 %v1748_v39  ;;  %v1580_v39 = vld [vmem:[%s1980_s1 + $0x2b0] sm:$0xff]  }
  0x48   :  { %1466 = vmatprep.subr.bf16.mxu1 %v1558_v17 }
  0x49   :  { %1445 = vmatpush3.bf16.msra.mxu0 %v1559_v18 }
  0x4a   :  { %1467 = vmatpush3.bf16.msra.mxu1 %v1560_v19  ;;  %1446 = vmatprep.subr.bf16.mxu0 %v1561_v20 }
  0x4b   :  { %1468 = vmatprep.subr.bf16.mxu1 %v1562_v21 }
  0x4d   :  { %1447 = vmatpush3.bf16.msra.mxu0 %v1563_v22 }
  0x4e   :  { %1469 = vmatpush3.bf16.msra.mxu1 %v1564_v23  ;;  %1448 = vmatprep.subr.bf16.mxu0 %v1565_v24 }
  0x4f   :  { %1470 = vmatprep.subr.bf16.mxu1 %v1566_v25 }
  0x51   :  { %1449 = vmatpush3.bf16.msra.mxu0 %v1567_v26 }
  0x52   :  { %1471 = vmatpush3.bf16.msra.mxu1 %v1568_v27  ;;  %1450 = vmatprep.subr.bf16.mxu0 %v1569_v28 }
  0x53   :  { %1472 = vmatprep.subr.bf16.mxu1 %v1570_v29 }
  0x55   :  { %1451 = vmatpush3.bf16.msra.mxu0 %v1571_v30 }
  0x56   :  { %1473 = vmatpush3.bf16.msra.mxu1 %v1572_v31  ;;  %1452 = vmatprep.subr.bf16.mxu0 %v1573_v32 }
  0x57   :  { %1474 = vmatprep.subr.bf16.mxu1 %v1574_v33 }
  0x59   :  { %1453 = vmatpush3.bf16.msra.mxu0 %v1575_v34 }
  0x5a   :  { %1475 = vmatpush3.bf16.msra.mxu1 %v1576_v35  ;;  %1454 = vmatprep.subr.bf16.mxu0 %v1577_v36 }
  0x5b   :  { %1476 = vmatprep.subr.bf16.mxu1 %v1578_v37 }
  0x5d   :  { %1455 = vmatpush3.bf16.msra.mxu0 %v1579_v38 }
  0x5e   :  { %1477 = vmatpush3.bf16.msra.mxu1 %v1580_v39  ;;  %1456 = vmatprep.subr.bf16.mxu0 %v1581_v41 }
  0x5f   :  { %1478 = vmatprep.subr.bf16.mxu1 %v1582_v42 }
  0x60   :  { %8 = vsyncpa [#allocation3], 0  ;;  %v1044_v52 = vlaneseq  ;;  %s1609_s1 = smov [#allocation2]   ;;  %v1353_v42 = vld [vmem:[%s1981_s2] ss:$0 sm:$0xff]  ;;  %vm1110_vm6 = vcmask 523264  }
  0x61   :  { %1457 = vmatpush3.bf16.msra.mxu0 %v1583_v44  ;;  %s1118_s26 = sshll.u32 %s1609_s1, 4  ;;  %s1119_s26 = int_to_ptr.vmem [resolvable:$true] %s1118_s26 }
  0x62   :  { %1479 = vmatpush3.bf16.msra.mxu1 %v1584_v45  ;;  %v1045_v60 = vshrl.u32 %v1044_v52, 7  ;;  %s1585_s29 = scalar_lea.vmem %s1119_s26, 256  ;;  %p1590_p1 = scmp.lt.s32.totalorder %s1119_s26, %s1119_s26 }
  0x63   :  { %p1586_p0 = scmp.ne.s32.totalorder %s1119_s26, %s1585_s29  ;;  %p1591_p2 = scmp.lt.s32.totalorder %s1585_s29, %s1585_s29 }
  0x64   :  { %995 = vmatmul.mubr.bf16.vlgmr.msra.gmra.mrb[8].mxu0 %v1750_v40  ;;  %vm1075_vm0 = vcmp.lt.s32.totalorder %v1045_v60, 1  ;;  %v1046_v0 = vadd.s32 8, %v1045_v60  ;;  %v1051_v1 = vand.u32 7, %v1045_v60  ;;  %vm1088_vm3 = vcmp.lt.s32.totalorder %v1045_v60, 7 }
  0x65   :  { %1036 = vmatmul.mubr.bf16.vlgmr.msra.gmra.mrb[8].mxu1 %v1759_v43  ;;  %p1592_p3 = por %p1591_p2, %p1590_p1 }
  0x66   :  { %v1058_v5 = vand.u32 7, %v1046_v0  ;;  %vm1071_vm1 = vcmp.ne.s32.totalorder %v1051_v1, 0  ;;  %vm1084_vm4 = vcmp.ne.s32.totalorder %v1051_v1, 7 }
  0x67   :  { %p1593_p4 = pnand %p1592_p3, %p1586_p0 }
  0x68   :  { %vm1072_vm2 = vcmp.ne.s32.totalorder %v1058_v5, 0  ;;  %vm1085_vm5 = vcmp.ne.s32.totalorder %v1058_v5, 7 }
  0xf6   :  { %v1370_v46 = vpop.f32.mrb[0].mxu0 }
  0xf7   :  { %v1392_v47 = vpop.f32.mrb[0].mxu1  ;;  %v1371_v48 = vpop.f32.mrb[1].mxu0 }
  0xf8   :  { %v1372_v49 = vadd.f32 %v1371_v48, %v1370_v46  ;;  %v1393_v50 = vpop.f32.mrb[1].mxu1  ;;  %v1373_v51 = vpop.f32.mrb[2].mxu0 }
  0xf9   :  { %v1394_v53 = vadd.f32 %v1393_v50, %v1392_v47  ;;  %v1395_v54 = vpop.f32.mrb[2].mxu1  ;;  %v1374_v55 = vpop.f32.mrb[3].mxu0 }
  0xfa   :  { %v1375_v56 = vadd.f32 %v1374_v55, %v1373_v51  ;;  %v1396_v57 = vpop.f32.mrb[3].mxu1 }
  0xfb   :  { %v360_v58 = vadd.f32 %v1394_v53, %v1372_v49  ;;  %v1397_v59 = vadd.f32 %v1396_v57, %v1395_v54 }
  0xfd   :  { %v363_v61 = vadd.f32 %v1397_v59, %v1375_v56  ;;  %v1073_v40 = vrot.slane %v360_v58, 7 }
  0xff   :  { %v1074_v62 = vrot.slane %v363_v61, 7 }
 0x101   :  { %v1077_v43 = vsel %vm1075_vm0, %v1074_v62, %v1073_v40  ;;  %v1076_v63 = vsel %vm1075_vm0, %v1073_v40, %v1074_v62 }
 0x102   :  { %v1082_v16 = vsel %vm1071_vm1, %v1077_v43, 0.0  ;;  %v1083_v19 = vsel %vm1072_vm2, %v1076_v63, 0.0 }
 0x117   :  { %v1414_v2 = vpop.f32.mrb[4].mxu0 }
 0x118   :  { %v1436_v3 = vpop.f32.mrb[4].mxu1  ;;  %v1415_v4 = vpop.f32.mrb[5].mxu0 }
 0x119   :  { %v1416_v6 = vadd.f32 %v1415_v4, %v1414_v2  ;;  %v1437_v7 = vpop.f32.mrb[5].mxu1  ;;  %v1417_v8 = vpop.f32.mrb[6].mxu0 }
 0x11a   :  { %v1438_v9 = vadd.f32 %v1437_v7, %v1436_v3  ;;  %v1439_v10 = vpop.f32.mrb[6].mxu1  ;;  %v1418_v11 = vpop.f32.mrb[7].mxu0 }
 0x11b   :  { %v1419_v12 = vadd.f32 %v1418_v11, %v1417_v8  ;;  %v1440_v13 = vpop.f32.mrb[7].mxu1 }
 0x11c   :  { %v699_v14 = vadd.f32 %v1438_v9, %v1416_v6  ;;  %v1441_v15 = vadd.f32 %v1440_v13, %v1439_v10 }
 0x11e   :  { %v1097_v17 = vadd.f32 %v1082_v16, %v699_v14  ;;  %v702_v18 = vadd.f32 %v1441_v15, %v1419_v12 }
 0x120   :  { %v1098_v20 = vadd.f32 %v1083_v19, %v702_v18 }
 0x137   :  { %v1458_v21 = vpop.f32.mrb[8].mxu0 }
 0x138   :  { %v1480_v22 = vpop.f32.mrb[8].mxu1  ;;  %v1459_v23 = vpop.f32.mrb[9].mxu0 }
 0x139   :  { %v1460_v24 = vadd.f32 %v1459_v23, %v1458_v21  ;;  %v1481_v25 = vpop.f32.mrb[9].mxu1  ;;  %v1461_v26 = vpop.f32.mrb[10].mxu0 }
 0x13a   :  { %v1482_v27 = vadd.f32 %v1481_v25, %v1480_v22  ;;  %v1483_v28 = vpop.f32.mrb[10].mxu1  ;;  %v1462_v29 = vpop.f32.mrb[11].mxu0 }
 0x13b   :  { %v1463_v30 = vadd.f32 %v1462_v29, %v1461_v26  ;;  %v1484_v31 = vpop.f32.mrb[11].mxu1 }
 0x13c   :  { %v1038_v32 = vadd.f32 %v1482_v27, %v1460_v24  ;;  %v1485_v33 = vadd.f32 %v1484_v31, %v1483_v28 }
 0x13e   :  { %v1041_v34 = vadd.f32 %v1485_v33, %v1463_v30  ;;  %v1086_v35 = vrot.slane %v1038_v32, 1 }
 0x140   :  { %v1087_v36 = vrot.slane %v1041_v34, 1 }
 0x142   :  { %v1089_v37 = vsel %vm1088_vm3, %v1086_v35, %v1087_v36  ;;  %v1090_v38 = vsel %vm1088_vm3, %v1087_v36, %v1086_v35 }
 0x143   :  { %v1095_v39 = vsel %vm1084_vm4, %v1089_v37, 0.0  ;;  %v1096_v41 = vsel %vm1085_vm5, %v1090_v38, 0.0 }
 0x144   :  { %v1099_v44 = vadd.f32 %v1097_v17, %v1095_v39  ;;  %v1100_v45 = vadd.f32 %v1098_v20, %v1096_v41 }
 0x146   :  { %v1108_v46 = vadd.f32 %v1353_v42, %v1099_v44  ;;  %v1109_v47 = vadd.f32 %v1353_v42, %v1100_v45 }
 0x148   :  { %1111 = vst.msk [vmem:[#allocation2] sm:$0xff] %vm1110_vm6, %v1108_v46  ;;  %1112 = vst.msk [vmem:[#allocation2 + $0x8] sm:$0xff] %vm1110_vm6, %v1109_v47 }
 0x149   :  { %1596 = shalt.err (!%p1593_p4)
}
 0x14a   :  { %s1597_s5 = scalar_lea.hbm %s1982_s3, 256 }
 0x14b   :  { %p1598_p5 = scmp.ne.s32.totalorder %s1982_s3, %s1597_s5  ;;  %p1601_p6 = scmp.lt.u32.totalorder %s1597_s5, %s1982_s3 }
 0x14d   :  { %p1603_p7 = pnand %p1601_p6, %p1598_p5 }
 0x14f   :  { %1606 = shalt.err (!%p1603_p7)
}
 0x150   :  { %s1610_s9 = smov 128   ;;  %s1611_s10 = smov 8  }
 0x151   :  { %1124 = dma.vmem_to_hbm [thread:$0]  %s1119_s26, 256, %s1982_s3, [#allocation3], %s1610_s9, %s1610_s9, %s1611_s10  }
 0x152   :  { %1607 = dma.done.wait [#allocation3], 256  }
 0x153   :  { %1608 = vsyncadd [#allocation3], 4294967040 }
 0x154   :  { %1128 = vsyncpa [#allocation3], 1 }

</bundles_post_ra>
